<compile_context>
chip_gen: v7x
topology: tpu7x:2x2x1
jax: 0.10.0
libtpu: 0.0.40
codegen_flags: <defaults>
</compile_context>

<pallas_src>
import functools
import math

import jax
import jax.numpy as jnp
from jax import lax
from jax.experimental import pallas as pl
from jax.experimental.pallas import tpu as pltpu

_MIB = 1024 * 1024


# ------------------------------ helpers ------------------------------------ #

def _round_up(a, b):
    return ((a + b - 1) // b) * b


def _vmem_budget_bytes():
    """Per-core VMEM budget with headroom (chip-aware; conservative fallback)."""
    cap = 64 * _MIB  # v7x per-TensorCore physical VMEM (smallest of v5e/v6e/v7x)
    try:
        cap = int(pltpu.get_tpu_info().vmem_capacity_bytes)
    except Exception:
        pass
    return max(16 * _MIB, int(cap * 0.70))


def _block_vmem_bytes(shape, itemsize):
    """VMEM footprint of one buffer of a block (lane dim pads to 128, sublane to 8)."""
    s = [int(d) for d in shape]
    s[-1] = _round_up(s[-1], 128)
    if len(s) >= 2:
        s[-2] = _round_up(s[-2], 8)
    out = itemsize
    for d in s:
        out *= d
    return out


def _pick_row_tile(n, max_tile):
    """Row tile (multiple of 8). Prefer a divisor of n so x needs no padding pass."""
    max_tile = max(8, (int(max_tile) // 8) * 8)
    if n % 8 == 0:
        for t in range(min(max_tile, n), 7, -8):
            if n % t == 0:
                if 2 * t >= min(max_tile, n):   # reject pathologically small divisors
                    return t, n
                break
    t = min(max_tile, _round_up(n, 8))
    return t, _round_up(n, t)


# ----------------------------- Pallas kernels ------------------------------ #

def _nt_matmul(x, w):
    # (tn, di) x (to, di)^T -> (tn, to) on the MXU, f32 accumulation.
    return lax.dot_general(x, w, (((1,), (1,)), ((), ())),
                           preferred_element_type=jnp.float32)


def _siren_f_kernel(x_ref, w_ref, b_ref, z_ref, *, w0):
    y = _nt_matmul(x_ref[...], w_ref[...]) + b_ref[...].astype(jnp.float32)
    z_ref[...] = jnp.sin(w0 * y).astype(z_ref.dtype)


def _siren_f_df_flat_kernel(x_ref, w_ref, b_ref, z_ref, d1_ref, *, w0, dim_in):
    # df block is lane-dense flat: (tile_n, tile_o * dim_in); column group o
    # occupies lanes [o*dim_in, (o+1)*dim_in).
    y = _nt_matmul(x_ref[...], w_ref[...]) + b_ref[...].astype(jnp.float32)
    z_ref[...] = jnp.sin(w0 * y).astype(z_ref.dtype)
    a1 = w0 * jnp.cos(w0 * y)                       # (tn, to) f32
    w = w_ref[...].astype(jnp.float32)              # (to, dim_in)
    tile_o = w.shape[0]
    for o in range(tile_o):                         # static unroll (dim_in < 128)
        piece = a1[:, o:o + 1] * w[o:o + 1, :]      # (tn, dim_in)
        d1_ref[:, o * dim_in:(o + 1) * dim_in] = piece.astype(d1_ref.dtype)


def _siren_f_df_kernel(x_ref, w_ref, b_ref, z_ref, d1_ref, *, w0, ci, n_chunks):
    # dim_in >= 128: 3-D df block, dim_in chunked in 128-aligned slabs so the
    # broadcast W tile / outer-product slab stays bounded (vreg + VMEM pressure).
    y = _nt_matmul(x_ref[...], w_ref[...]) + b_ref[...].astype(jnp.float32)
    z_ref[...] = jnp.sin(w0 * y).astype(z_ref.dtype)
    a1 = (w0 * jnp.cos(w0 * y))[:, :, None]         # (tn, to, 1), hoisted broadcast

    @pl.loop(0, n_chunks)
    def _(c):
        off = pl.multiple_of(c * ci, ci)
        wc = w_ref[:, pl.ds(off, ci)].astype(jnp.float32)          # (to, ci)
        d1_ref[:, :, pl.ds(off, ci)] = (a1 * wc[None, :, :]).astype(d1_ref.dtype)


# ------------------------------ Wrapper ------------------------------------ #

def siren_forward(x, weight, bias=None, *, w0=1.0, max_derivative=0):
    """Returns (f,) or (f, df), mirroring SirenOutput.tensors."""
    dim_out, dim_in = weight.shape
    lead = x.shape[:-1]
    xf = x.reshape(-1, dim_in)
    n = xf.shape[0]
    x_item = jnp.dtype(x.dtype).itemsize
    w_item = jnp.dtype(weight.dtype).itemsize
    if bias is None:
        bias = jnp.zeros((dim_out,), weight.dtype)

    budget = _vmem_budget_bytes()
    blk_budget = int(budget * 0.8)        # block buffers; rest for compiler scratch

    if max_derivative == 0:
        # ---------------- f only (mem-bound; big row tiles) ----------------
        if dim_in * dim_out * w_item <= 4 * _MIB:
            tile_o, o_pad = dim_out, dim_out              # whole W resident
        else:
            tile_o = 512                                   # tile dim_out for big W
            o_pad = _round_up(dim_out, tile_o)

        fixed = 2 * (_block_vmem_bytes((tile_o, dim_in), w_item)
                     + _block_vmem_bytes((1, tile_o), w_item))
        per_row = 2 * (_round_up(dim_in, 128) + _round_up(tile_o, 128)) * x_item
        tn_cap = max(8, (blk_budget - fixed) // max(per_row, 1))
        tile_n, n_pad = _pick_row_tile(n, min(512, tn_cap))

        xp = xf if n_pad == n else jnp.pad(xf, ((0, n_pad - n), (0, 0)))
        wp = weight if o_pad == dim_out else jnp.pad(weight, ((0, o_pad - dim_out), (0, 0)))
        bp = bias if o_pad == dim_out else jnp.pad(bias, (0, o_pad - dim_out))
        b2 = bp.reshape(1, o_pad)

        cost = pl.CostEstimate(
            flops=2 * n_pad * dim_in * o_pad,
            transcendentals=n_pad * o_pad,
            bytes_accessed=(n_pad * dim_in * x_item
                            + o_pad * (dim_in + 1) * w_item
                            + n_pad * o_pad * x_item),
        )
        z = pl.pallas_call(
            functools.partial(_siren_f_kernel, w0=w0),
            out_shape=jax.ShapeDtypeStruct((n_pad, o_pad), x.dtype),
            grid=(n_pad // tile_n, o_pad // tile_o),
            in_specs=[
                pl.BlockSpec((tile_n, dim_in), lambda i, j: (i, 0)),
                pl.BlockSpec((tile_o, dim_in), lambda i, j: (j, 0)),
                pl.BlockSpec((1, tile_o), lambda i, j: (0, j)),
            ],
            out_specs=pl.BlockSpec((tile_n, tile_o), lambda i, j: (i, j)),
            compiler_params=pltpu.CompilerParams(
                dimension_semantics=("parallel", "parallel"),
                vmem_limit_bytes=budget),
            cost_estimate=cost,
        )(xp, wp, b2)
        if n_pad != n or o_pad != dim_out:
            z = z[:n, :dim_out]
        return (z.reshape(*lead, dim_out),)

    if max_derivative == 1:
        # ---------------- f + df (HBM-write bound on the df slab) ----------------
        tile_o = dim_out if dim_out <= 256 else 256
        o_pad = _round_up(dim_out, tile_o)
        # Lane-dense flat df block when dim_in is a small power-of-two-ish divisor
        # of 128; otherwise the 3-D layout (already lane-dense for dim_in >= 128).
        flat = (dim_in < 128) and (128 % dim_in == 0)
        # TODO(synk): dim_in < 128 that does not divide 128 (e.g. 3-D coords) still
        # uses the lane-sparse 3-D df layout.

        if flat:
            df_row = _round_up(tile_o * dim_in, 128) * x_item
        else:
            df_row = tile_o * _round_up(dim_in, 128) * x_item
        per_row = 2 * (df_row
                       + _round_up(tile_o, 128) * x_item
                       + _round_up(dim_in, 128) * x_item)
        fixed = 2 * (_block_vmem_bytes((tile_o, dim_in), w_item)
                     + _block_vmem_bytes((1, tile_o), w_item))
        tn_cap = max(8, (blk_budget - fixed) // max(per_row, 1))
        tile_n, n_pad = _pick_row_tile(n, min(128, tn_cap))

        xp = xf if n_pad == n else jnp.pad(xf, ((0, n_pad - n), (0, 0)))
        wp = weight if o_pad == dim_out else jnp.pad(weight, ((0, o_pad - dim_out), (0, 0)))
        bp = bias if o_pad == dim_out else jnp.pad(bias, (0, o_pad - dim_out))
        b2 = bp.reshape(1, o_pad)

        cost = pl.CostEstimate(
            flops=2 * n_pad * dim_in * o_pad + n_pad * o_pad * dim_in,
            transcendentals=2 * n_pad * o_pad,
            bytes_accessed=(n_pad * dim_in * x_item
                            + o_pad * (dim_in + 1) * w_item
                            + n_pad * o_pad * (dim_in + 1) * x_item),
        )
        common = dict(
            grid=(n_pad // tile_n, o_pad // tile_o),
            in_specs=[
                pl.BlockSpec((tile_n, dim_in), lambda i, j: (i, 0)),
                pl.BlockSpec((tile_o, dim_in), lambda i, j: (j, 0)),
                pl.BlockSpec((1, tile_o), lambda i, j: (0, j)),
            ],
            compiler_params=pltpu.CompilerParams(
                dimension_semantics=("parallel", "parallel"),
                vmem_limit_bytes=budget),
            cost_estimate=cost,
        )

        if flat:
            z, d1 = pl.pallas_call(
                functools.partial(_siren_f_df_flat_kernel, w0=w0, dim_in=dim_in),
                out_shape=(jax.ShapeDtypeStruct((n_pad, o_pad), x.dtype),
                           jax.ShapeDtypeStruct((n_pad, o_pad * dim_in), x.dtype)),
                out_specs=(pl.BlockSpec((tile_n, tile_o), lambda i, j: (i, j)),
                           pl.BlockSpec((tile_n, tile_o * dim_in),
                                        lambda i, j: (i, j))),
                **common,
            )(xp, wp, b2)
            d1 = d1.reshape(n_pad, o_pad, dim_in)   # row-major: free re-view
        else:
            ci = 128 if dim_in % 128 == 0 else dim_in
            z, d1 = pl.pallas_call(
                functools.partial(_siren_f_df_kernel, w0=w0, ci=ci,
                                  n_chunks=dim_in // ci),
                out_shape=(jax.ShapeDtypeStruct((n_pad, o_pad), x.dtype),
                           jax.ShapeDtypeStruct((n_pad, o_pad, dim_in), x.dtype)),
                out_specs=(pl.BlockSpec((tile_n, tile_o), lambda i, j: (i, j)),
                           pl.BlockSpec((tile_n, tile_o, dim_in),
                                        lambda i, j: (i, j, 0))),
                **common,
            )(xp, wp, b2)

        if n_pad != n or o_pad != dim_out:
            z = z[:n, :dim_out]
            d1 = d1[:n, :dim_out, :]
        return (z.reshape(*lead, dim_out),
                d1.reshape(*lead, dim_out, dim_in))

    # TODO(synk): higher-order derivatives (d2f..d4f multi-way outer products) not implemented in-kernel
    raise NotImplementedError(max_derivative)


# ------------------------------ Param init --------------------------------- #

def siren_init(key, dim_in, dim_out, *, w0=1.0, c=6.0, is_first=False,
               dtype=jnp.float32):
    w_std = (1.0 / dim_in) if is_first else (math.sqrt(c / dim_in) / w0)
    kw, kb = jax.random.split(key)
    weight = jax.random.uniform(kw, (dim_out, dim_in), dtype,
                                minval=-w_std, maxval=w_std)
    bias = jax.random.uniform(kb, (dim_out,), dtype,
                              minval=-w_std, maxval=w_std)
    return weight, bias


# --------------------------------- Main ------------------------------------ #

if __name__ == "__main__":
    key = jax.random.PRNGKey(0)
    k1, k2, k3, k4 = jax.random.split(key, 4)
    # Tolerance note: the in-kernel matmul may use the MXU's bf16-pass f32 mode
    # while the XLA reference may differ; 1e-2 abs on O(1) values still catches
    # any indexing/formula error by orders of magnitude.
    TOL = 1e-2

    # --- small case: exercises f-only and the lane-dense flat f+df path ---
    batch, seq, dim_in, dim_out = 2, 8, 16, 32
    w0 = 0.5
    x = jax.random.normal(k1, (batch, seq, dim_in), jnp.float32)
    weight, bias = siren_init(k2, dim_in, dim_out, w0=w0, c=6.0, is_first=False)

    (f,) = siren_forward(x, weight, bias, w0=w0, max_derivative=0)
    f1, df = siren_forward(x, weight, bias, w0=w0, max_derivative=1)
    jax.block_until_ready((f, f1, df))

    y_ref = jnp.einsum("bsi,oi->bso", x, weight, precision="highest") + bias
    f_ref = jnp.sin(w0 * y_ref)
    df_ref = jnp.einsum("bso,oi->bsoi", w0 * jnp.cos(w0 * y_ref), weight)
    assert f.shape == (batch, seq, dim_out)
    assert df.shape == (batch, seq, dim_out, dim_in)
    assert jnp.allclose(f, f_ref, atol=TOL), "f mismatch (small)"
    assert jnp.allclose(f1, f_ref, atol=TOL), "f (der path) mismatch (small)"
    assert jnp.allclose(df, df_ref, atol=TOL), "df mismatch (small)"

    # --- medium case: exercises chunked 3-D df path + dim_out tiling/padding ---
    b2_, s2_, di2, do2 = 2, 24, 256, 384
    w0b = 1.0
    x2 = jax.random.normal(k3, (b2_, s2_, di2), jnp.float32)
    wt2, bs2 = siren_init(k4, di2, do2, w0=w0b, c=6.0, is_first=False)

    (g,) = siren_forward(x2, wt2, bs2, w0=w0b, max_derivative=0)
    g1, dg = siren_forward(x2, wt2, bs2, w0=w0b, max_derivative=1)
    jax.block_until_ready((g, g1, dg))

    y2 = jnp.einsum("bsi,oi->bso", x2, wt2, precision="highest") + bs2
    g_ref = jnp.sin(w0b * y2)
    dg_ref = jnp.einsum("bso,oi->bsoi", w0b * jnp.cos(w0b * y2), wt2)
    assert g.shape == (b2_, s2_, do2)
    assert dg.shape == (b2_, s2_, do2, di2)
    assert jnp.allclose(g, g_ref, atol=TOL), "f mismatch (medium)"
    assert jnp.allclose(g1, g_ref, atol=TOL), "f (der path) mismatch (medium)"
    assert jnp.allclose(dg, dg_ref, atol=TOL), "df mismatch (medium)"

    print("KERNEL_OK")
</pallas_src>

<mosaic_0001>
module attributes {stable_mosaic.version = 11 : i64} {
  func.func @_siren_f_kernel(%arg0: i32, %arg1: i32, %arg2: memref<16x16xf32, #tpu.memory_space<vmem>>, %arg3: memref<32x16xf32, #tpu.memory_space<vmem>>, %arg4: memref<1x32xf32, #tpu.memory_space<vmem>>, %arg5: memref<16x32xf32, #tpu.memory_space<vmem>>) attributes {dimension_semantics = [#tpu.dimension_semantics<parallel>, #tpu.dimension_semantics<parallel>], iteration_bounds = array<i64: 1, 1>, scalar_prefetch = 0 : i64, scratch_operands = 0 : i64, tpu.core_type = #tpu.core_type<tc>, window_params = [{transform_indices = @transform_0, window_bounds = array<i64: 16, 16>}, {transform_indices = @transform_1, window_bounds = array<i64: 32, 16>}, {transform_indices = @transform_2, window_bounds = array<i64: 1, 32>}, {transform_indices = @transform_3, window_bounds = array<i64: 16, 32>}]} {
    %c0 = arith.constant 0 : index
    %c0_0 = arith.constant 0 : index
    %0 = vector.load %arg2[%c0, %c0_0] : memref<16x16xf32, #tpu.memory_space<vmem>>, vector<16x16xf32>
    %c0_1 = arith.constant 0 : index
    %c0_2 = arith.constant 0 : index
    %1 = vector.load %arg3[%c0_1, %c0_2] : memref<32x16xf32, #tpu.memory_space<vmem>>, vector<32x16xf32>
    %cst = arith.constant dense<0.000000e+00> : vector<16x32xf32>
    %2 = tpu.matmul %0, %1, %cst {dimension_numbers = #tpu.dot_dimension_numbers<[1], [1], [0], [0], [0, 0, 1, 0], [], []>} : vector<16x16xf32>, vector<32x16xf32>, vector<16x32xf32> -> vector<16x32xf32>
    %c0_3 = arith.constant 0 : index
    %c0_4 = arith.constant 0 : index
    %3 = vector.load %arg4[%c0_3, %c0_4] : memref<1x32xf32, #tpu.memory_space<vmem>>, vector<1x32xf32>
    %4 = vector.broadcast %3 : vector<1x32xf32> to vector<16x32xf32>
    %5 = arith.addf %2, %4 : vector<16x32xf32>
    %cst_5 = arith.constant 5.000000e-01 : f32
    %6 = vector.broadcast %cst_5 : f32 to vector<16x32xf32>
    %7 = arith.mulf %6, %5 : vector<16x32xf32>
    %8 = math.sin %7 : vector<16x32xf32>
    %c0_6 = arith.constant 0 : index
    %c0_7 = arith.constant 0 : index
    %9 = vector.load %arg5[%c0_6, %c0_7] : memref<16x32xf32, #tpu.memory_space<vmem>>, vector<16x32xf32>
    tpu.vector_store %arg5[%c0_6, %c0_7], %8 {strides = array<i32>} : memref<16x32xf32, #tpu.memory_space<vmem>>, vector<16x32xf32>,
    return
  }
  func.func @transform_0(%arg0: i32, %arg1: i32) -> (i32, i32) {
    %c0_i32 = arith.constant 0 : i32
    %c0_i32_0 = arith.constant 0 : i32
    return %arg0, %c0_i32 : i32, i32
  }
  func.func @transform_1(%arg0: i32, %arg1: i32) -> (i32, i32) {
    %c0_i32 = arith.constant 0 : i32
    %c0_i32_0 = arith.constant 0 : i32
    return %arg1, %c0_i32 : i32, i32
  }
  func.func @transform_2(%arg0: i32, %arg1: i32) -> (i32, i32) {
    %c0_i32 = arith.constant 0 : i32
    %c0_i32_0 = arith.constant 0 : i32
    return %c0_i32, %arg1 : i32, i32
  }
  func.func @transform_3(%arg0: i32, %arg1: i32) -> (i32, i32) {
    %c0_i32 = arith.constant 0 : i32
    return %arg0, %arg1 : i32, i32
  }
}

</mosaic_0001>

<bundles_post_ra>
// kernel: tpu_custom_call.1
= control target key start
LH: loop header
LB: loop body
LE: loop exit
PB: predicated region body
PF: predicated region fallthrough
CT: control target
= control target key end

     0   :  { %vm28_vm0 = vcmask 130048   ;;  %s570_s0 = inlined_call_operand.vmem [shape: f32[16,16], index: 0, kind: input, shape index: {}]   ;;  %s571_s1 = inlined_call_operand.vmem [shape: f32[32,16], index: 1, kind: input, shape index: {}]   ;;  %s572_s2 = inlined_call_operand.vmem [shape: f32[1,32], index: 2, kind: input, shape index: {}]   ;;  %s573_s3 = inlined_call_operand.hbm [shape: f32[16,32], index: 3, kind: output, shape index: {}]  }
   0x1   :  { %v17_v0 = vld [vmem:[%s571_s1] sm:$0xff]  ;;  %v18_v1 = vld [vmem:[%s571_s1 + $0x8] sm:$0xff]  ;;  %v19_v2 = vld [vmem:[%s571_s1 + $0x10] sm:$0xff] }
   0x2   :  { %v383_v3 = vpack.c.bf16 %v18_v1, %v17_v0  ;;  %vm384_vm1 = vmpackc.low %vm28_vm0, %vm28_vm0  ;;  %v20_v4 = vld [vmem:[%s571_s1 + $0x18] sm:$0xff]  ;;  %v15_v5 = vld [vmem:[%s570_s0] sm:$0xff] }
   0x3   :  { %v389_v6 = vpack.c.bf16 %v20_v4, %v19_v2  ;;  %380 = vmatprep.mubr.msk.f32.mxu0 %vm28_vm0, %v15_v5 }
   0x4   :  { %8 = vsyncpa [#allocation3], 0  ;;  %385 = vmatprep.subr.msk.bf16.mxu0 %vm384_vm1, %v383_v3  ;;  %v16_v7 = vld [vmem:[%s570_s0 + $0x8] sm:$0xff]  ;;  %v351_v8 = vld [vmem:[%s572_s2] ss:$0 sm:$0xff]  ;;  %s450_s0 = smov [#allocation2]  }
   0x5   :  { %388 = vmatpush3.bf16.xpose.msk.msra.mxu0 %vm384_vm1, %v383_v3  ;;  %v444_v35 = vmov 683565275   ;;  %v445_v39 = vmov 2475754826   ;;  %v446_v41 = vmov 2131351028  }
   0x6   :  { %391 = vmatprep.subr.msk.bf16.mxu0 %vm384_vm1, %v389_v6  ;;  %v447_v43 = vmov 2102212464   ;;  %v448_v45 = vmov 920167782   ;;  %v449_v52 = vmov 1326507024  }
   0x7   :  { %s340_s1 = sshll.u32 %s450_s0, 4  ;;  %s341_s1 = int_to_ptr.vmem [resolvable:$true] %s340_s1 }
   0x8   :  { %s420_s2 = scalar_lea.vmem %s341_s1, 256  ;;  %p425_p1 = scmp.lt.s32.totalorder %s341_s1, %s341_s1 }
   0x9   :  { %p421_p0 = scmp.ne.s32.totalorder %s341_s1, %s420_s2  ;;  %p426_p2 = scmp.lt.s32.totalorder %s420_s2, %s420_s2 }
   0xb   :  { %p427_p3 = por %p426_p2, %p425_p1 }
   0xd   :  { %394 = vmatpush3.bf16.xpose.msk.msra.mxu0 %vm384_vm1, %v389_v6  ;;  %p428_p4 = pnand %p427_p3, %p421_p0 }
  0x14   :  { %381 = vmatmul.mubr.msk.f32.vlgmr.msra.gmra.mrb[0].mxu0 %vm28_vm0, %v16_v7 }
  0xe7   :  { %v382_v9 = vpop.f32.mrb[0].mxu0 }
  0xe8   :  { %v119_v10 = vadd.f32 %v382_v9, %v351_v8  ;;  %v113_v11 = vpop.f32.mrb[1].mxu0 }
  0xe9   :  { %v114_v12 = vadd.f32 %v351_v8, %v113_v11 }
  0xea   :  { %v494_v13 = vmul.f32 0.5, %v119_v10 }
  0xeb   :  { %v496_v14 = vmul.f32 0.5, %v114_v12 }
  0xec   :  { %v228_v15 = vand.u32 2147483647, %v494_v13  ;;  %v231_v16 = vand.u32 2139095040, %v494_v13  ;;  %vm230_vm0 = vcmp.lt.s32.totalorder %v494_v13, 0 }
  0xed   :  { %v127_v17 = vand.u32 2139095040, %v496_v14  ;;  %v124_v20 = vand.u32 2147483647, %v496_v14 }
  0xee   :  { %v232_v18 = vshrl.u32 %v231_v16, 23  ;;  %v235_v19 = vand.u32 8388607, %v228_v15  ;;  %vm229_vm1 = vcmp.le.f32.partialorder %v228_v15, 0.7853982 }
  0xef   :  { %v128_v21 = vshrl.u32 %v127_v17, 23  ;;  %v506_v26 = vand.u32 8388607, %v124_v20 }
  0xf0   :  { %v362_v22 = vadd.s32 4294967169, %v232_v18  ;;  %v236_v25 = vor.u32 8388608, %v235_v19 }
  0xf1   :  { %v358_v23 = vadd.s32 4294967169, %v128_v21  ;;  %v132_v33 = vor.u32 8388608, %v506_v26 }
  0xf2   :  { %v238_v24 = vadd.s32 1, %v362_v22  ;;  %v508_v32 = vshll.u32 %v236_v25, 8 }
  0xf3   :  { %v134_v27 = vadd.s32 1, %v358_v23 }
  0xf4   :  { %vm239_vm2 = vcmp.gt.s32.totalorder %v238_v24, 0 }
  0xf5   :  { %v240_v28 = vsel %vm239_vm2, %v238_v24, 0  ;;  %vm135_vm3 = vcmp.gt.s32.totalorder %v134_v27, 0  ;;  %vm126_vm2 = vcmp.lt.s32.totalorder %v496_v14, 0 }
  0xf6   :  { %v241_v29 = vshrl.u32 %v240_v28, 5  ;;  %v242_v30 = vand.u32 31, %v240_v28  ;;  %v136_v31 = vsel %vm135_vm3, %v134_v27, 0  ;;  %v172_v27 = vshll.u32 %v132_v33, 8 }
  0xf7   :  { %v511_v37 = vshrl.u32 %v136_v31, 5  ;;  %v138_v38 = vand.u32 31, %v136_v31  ;;  %vm125_vm3 = vcmp.le.f32.partialorder %v124_v20, 0.7853982 }
  0xf8   :  { %v243_v34 = vsub.s32 32, %v242_v30  ;;  %v245_v36 = vshll.u32 %v444_v35, %v242_v30  ;;  %v248_v40 = vshll.u32 %v445_v39, %v242_v30  ;;  %v251_v42 = vshll.u32 %v446_v41, %v242_v30 }
  0xf9   :  { %v254_v44 = vshll.u32 %v447_v43, %v242_v30  ;;  %v257_v46 = vshll.u32 %v448_v45, %v242_v30  ;;  %vm260_vm4 = vcmp.lt.s32.totalorder %v241_v29, 1  ;;  %vm261_vm5 = vcmp.lt.s32.totalorder %v241_v29, 2 }
  0xfa   :  { %v246_v47 = vshrl.u32 %v445_v39, %v243_v34  ;;  %v249_v48 = vshrl.u32 %v446_v41, %v243_v34  ;;  %v252_v49 = vshrl.u32 %v447_v43, %v243_v34  ;;  %v244_v50 = vshrl.u32 %v444_v35, %v243_v34 }
  0xfb   :  { %v255_v51 = vshrl.u32 %v448_v45, %v243_v34  ;;  %v258_v53 = vshrl.u32 %v449_v52, %v243_v34  ;;  %v139_v57 = vsub.s32 32, %v138_v38  ;;  %vm262_vm6 = vcmp.lt.s32.totalorder %v241_v29, 3 }
  0xfc   :  { %v247_v54 = vor.u32 %v246_v47, %v245_v36  ;;  %v250_v55 = vor.u32 %v249_v48, %v248_v40  ;;  %v253_v56 = vor.u32 %v252_v49, %v251_v42  ;;  %vm263_vm7 = vcmp.lt.s32.totalorder %v241_v29, 4 }
  0xfd   :  { %v256_v58 = vor.u32 %v255_v51, %v254_v44  ;;  %v259_v59 = vor.u32 %v258_v53, %v257_v46  ;;  %v141_v3 = vshll.u32 %v444_v35, %v138_v38  ;;  %v142_v6 = vshrl.u32 %v445_v39, %v139_v57 }
  0xfe   :  { %v264_v60 = vsel %vm260_vm4, %v244_v50, %v247_v54  ;;  %v265_v61 = vsel %vm263_vm7, %v253_v56, 2102212464  ;;  %v268_v62 = vsel %vm260_vm4, %v247_v54, %v250_v55  ;;  %v272_v63 = vsel %vm260_vm4, %v250_v55, %v253_v56 }
  0xff   :  { %v266_v0 = vsel %vm262_vm6, %v250_v55, %v265_v61  ;;  %v269_v1 = vsel %vm263_vm7, %v256_v58, 920167782  ;;  %v273_v2 = vsel %vm263_vm7, %v259_v59, 1326507024  ;;  %v144_v7 = vshll.u32 %v445_v39, %v138_v38 }
 0x100   :  { %v270_v4 = vsel %vm262_vm6, %v253_v56, %v269_v1  ;;  %v274_v5 = vsel %vm262_vm6, %v256_v58, %v273_v2  ;;  %v267_v8 = vsel %vm261_vm5, %v264_v60, %v266_v0  ;;  %v145_v11 = vshrl.u32 %v446_v41, %v139_v57 }
 0x101   :  { %v271_v9 = vsel %vm261_vm5, %v268_v62, %v270_v4  ;;  %v275_v10 = vsel %vm261_vm5, %v272_v63, %v274_v5  ;;  %v143_v19 = vor.u32 %v142_v6, %v141_v3  ;;  %v147_v22 = vshll.u32 %v446_v41, %v138_v38 }
 0x102   :  { %v520_v12 = vmul.u32.u64.low %v508_v32, %v275_v10  ;;  %v521_v16 = vmul.u32.u64.high %v508_v32, %v275_v10, %v520_v12  ;;  %v524_v17 = vmul.u32.u64.low %v508_v32, %v271_v9  ;;  %v525_v18 = vmul.u32.u64.high %v508_v32, %v271_v9, %v524_v17 }
 0x103   :  { %v146_v21 = vor.u32 %v145_v11, %v144_v7  ;;  %v148_v23 = vshrl.u32 %v447_v43, %v139_v57  ;;  %v150_v24 = vshll.u32 %v447_v43, %v138_v38  ;;  %v151_v25 = vshrl.u32 %v448_v45, %v139_v57 }
 0x104   :  { %v154_v26 = vshrl.u32 %v449_v52, %v139_v57  ;;  %v283_v28 = vmul.u32 %v508_v32, %v267_v8  ;;  %v140_v29 = vshrl.u32 %v444_v35, %v139_v57  ;;  %v153_v31 = vshll.u32 %v448_v45, %v138_v38 }
 0x105   :  { %v149_v30 = vor.u32 %v148_v23, %v147_v22  ;;  %vm285_vm8 = vc.u32 %v521_v16, %v524_v17  ;;  %v286_v34 = vadd.s32 1, %v525_v18  ;;  %v152_v36 = vor.u32 %v151_v25, %v150_v24 }
 0x106   :  { %vm156_vm9 = vcmp.lt.s32.totalorder %v511_v37, 1  ;;  %v155_v39 = vor.u32 %v154_v26, %v153_v31  ;;  %vm158_vm10 = vcmp.lt.s32.totalorder %v511_v37, 3  ;;  %vm159_vm11 = vcmp.lt.s32.totalorder %v511_v37, 4 }
 0x107   :  { %v164_v40 = vsel %vm156_vm9, %v143_v19, %v146_v21  ;;  %v287_v33 = vsel %vm285_vm8, %v286_v34, %v525_v18  ;;  %v161_v41 = vsel %vm159_vm11, %v149_v30, 2102212464  ;;  %v165_v32 = vsel %vm159_vm11, %v152_v36, 920167782 }
 0x108   :  { %v168_v35 = vsel %vm156_vm9, %v146_v21, %v149_v30  ;;  %v288_v42 = vadd.s32 %v287_v33, %v283_v28  ;;  %vm157_vm12 = vcmp.lt.s32.totalorder %v511_v37, 2  ;;  %v166_v38 = vsel %vm158_vm10, %v149_v30, %v165_v32 }
 0x109   :  { %v169_v43 = vsel %vm159_vm11, %v155_v39, 1326507024  ;;  %v160_v44 = vsel %vm156_vm9, %v140_v29, %v143_v19  ;;  %v162_v45 = vsel %vm158_vm10, %v146_v21, %v161_v41  ;;  %v167_v46 = vsel %vm157_vm12, %v164_v40, %v166_v38 }
 0x10a   :  { %v170_v47 = vsel %vm158_vm10, %v152_v36, %v169_v43  ;;  %v289_v48 = vadd.s32 536870912, %v288_v42  ;;  %v535_v50 = vmul.u32.u64.low %v172_v27, %v167_v46  ;;  %v536_v51 = vmul.u32.u64.high %v172_v27, %v167_v46, %v535_v50 }
 0x10b   :  { %v171_v49 = vsel %vm157_vm12, %v168_v35, %v170_v47  ;;  %v163_v55 = vsel %vm157_vm12, %v160_v44, %v162_v45  ;;  %v284_v7 = vadd.s32 %v524_v17, %v521_v16  ;;  %vm332_vm7 = vcmask 261120  }
 0x10c   :  { %v538_v52 = vmul.u32.u64.low %v172_v27, %v171_v49  ;;  %v539_v53 = vmul.u32.u64.high %v172_v27, %v171_v49, %v538_v52  ;;  %v290_v54 = vshrl.u32 %v289_v48, 30  ;;  %v182_v57 = vadd.s32 1, %v536_v51 }
 0x10d   :  { %v179_v37 = vmul.u32 %v172_v27, %v163_v55  ;;  %vm320_vm8 = vweird.f32 %v494_v13  ;;  %vm216_vm12 = vweird.f32 %v496_v14 }
 0x10e   :  { %v291_v56 = vshll.u32 %v290_v54, 30  ;;  %vm181_vm13 = vc.u32 %v539_v53, %v535_v50  ;;  %v180_v28 = vadd.s32 %v535_v50, %v539_v53  ;;  %v314_v17 = vsub.s32 4, %v290_v54 }
 0x10f   :  { %v183_v59 = vsel %vm181_vm13, %v182_v57, %v536_v51 }
 0x110   :  { %v292_v58 = vsub.s32 %v288_v42, %v291_v56  ;;  %v184_v60 = vadd.s32 %v183_v59, %v179_v37  ;;  %v315_v32 = vsel %vm230_vm0, %v314_v17, %v290_v54 }
 0x111   :  { %v317_v38 = vsel %vm229_vm1, 0, %v315_v32 }
 0x112   :  { %v294_v61 = vsub.s32 0, %v292_v58  ;;  %v185_v62 = vadd.s32 536870912, %v184_v60  ;;  %v321_v47 = vadd.s32 3, %v317_v38 }
 0x114   :  { %v363_v63 = vmin.u32 %v294_v61, %v292_v58  ;;  %v186_v0 = vshrl.u32 %v185_v62, 30  ;;  %v322_v51 = vand.u32 3, %v321_v47 }
 0x116   :  { %v296_v1 = vclz %v363_v63  ;;  %v187_v2 = vshll.u32 %v186_v0, 30  ;;  %v210_v46 = vsub.s32 4, %v186_v0  ;;  %vm327_vm4 = vcmp.eq.s32.totalorder %v322_v51, 2 }
 0x117   :  { %vm324_vm5 = vcmp.eq.s32.totalorder %v322_v51, 0  ;;  %vm323_vm6 = vcmp.lt.s32.totalorder %v322_v51, 2 }
 0x118   :  { %v364_v3 = vadd.s32 4294967294, %v296_v1  ;;  %v188_v4 = vsub.s32 %v184_v60, %v187_v2  ;;  %v211_v49 = vsel %vm126_vm2, %v210_v46, %v186_v0 }
 0x119   :  { %v213_v53 = vsel %vm125_vm3, 0, %v211_v49 }
 0x11a   :  { %vm365_vm14 = vcmp.lt.s32.totalorder %v364_v3, 0  ;;  %v190_v6 = vsub.s32 0, %v188_v4  ;;  %v217_v57 = vadd.s32 3, %v213_v53 }
 0x11b   :  { %v299_v5 = vsel %vm365_vm14, 0, %v364_v3 }
 0x11c   :  { %v300_v8 = vsub.s32 32, %v299_v5  ;;  %v304_v9 = vsub.s32 4294967266, %v299_v5  ;;  %v359_v10 = vmin.u32 %v190_v6, %v188_v4  ;;  %v301_v11 = vshll.u32 %v292_v58, %v299_v5 }
 0x11d   :  { %v218_v60 = vand.u32 3, %v217_v57 }
 0x11e   :  { %v302_v12 = vshrl.u32 %v284_v7, %v300_v8  ;;  %v305_v18 = vadd.s32 127, %v304_v9  ;;  %v192_v19 = vclz %v359_v10 }
 0x11f   :  { %vm223_vm9 = vcmp.eq.s32.totalorder %v218_v60, 2  ;;  %vm220_vm10 = vcmp.eq.s32.totalorder %v218_v60, 0  ;;  %vm219_vm11 = vcmp.lt.s32.totalorder %v218_v60, 2 }
 0x120   :  { %v303_v21 = vor.u32 %v302_v12, %v301_v11  ;;  %v306_v22 = vshll.u32 %v305_v18, 23  ;;  %v360_v23 = vadd.s32 4294967294, %v192_v19 }
 0x122   :  { %v307_v24 = vor.u32 4788187, %v306_v22  ;;  %vm361_vm15 = vcmp.lt.s32.totalorder %v360_v23, 0  ;;  %v310_v26 = vcvt.s32.f32 %v303_v21 }
 0x123   :  { %v195_v27 = vsel %vm361_vm15, 0, %v360_v23 }
 0x124   :  { %v308_v25 = vand.u32 2147483647, %v307_v24  ;;  %v196_v29 = vsub.s32 32, %v195_v27  ;;  %v200_v30 = vsub.s32 4294967266, %v195_v27  ;;  %v197_v31 = vshll.u32 %v188_v4, %v195_v27 }
 0x126   :  { %v311_v16 = vmul.f32 %v310_v26, %v308_v25  ;;  %v198_v34 = vshrl.u32 %v180_v28, %v196_v29  ;;  %v201_v36 = vadd.s32 127, %v200_v30 }
 0x128   :  { %v312_v39 = vxor.u32 2147483648, %v311_v16  ;;  %v199_v40 = vor.u32 %v198_v34, %v197_v31  ;;  %v202_v33 = vshll.u32 %v201_v36, 23 }
 0x12a   :  { %v313_v41 = vsel %vm230_vm0, %v312_v39, %v311_v16  ;;  %v203_v42 = vor.u32 4788187, %v202_v33  ;;  %v206_v44 = vcvt.s32.f32 %v199_v40 }
 0x12b   :  { %v316_v35 = vsel %vm229_vm1, %v494_v13, %v313_v41 }
 0x12c   :  { %412 = vcosq.f32 %v316_v35  ;;  %v204_v43 = vand.u32 2147483647, %v203_v42 }
 0x12d   :  { %414 = vsinq.f32 %v316_v35 }
 0x12e   :  { %v207_v45 = vmul.f32 %v206_v44, %v204_v43 }
 0x130   :  { %v208_v48 = vxor.u32 2147483648, %v207_v45 }
 0x132   :  { %v209_v15 = vsel %vm126_vm2, %v208_v48, %v207_v45 }
 0x133   :  { %v212_v50 = vsel %vm125_vm3, %v496_v14, %v209_v15 }
 0x134   :  { %416 = vcosq.f32 %v212_v50 }
 0x135   :  { %418 = vsinq.f32 %v212_v50 }
 0x136   :  { %v413_v52 = vpop.eup %412 }
 0x137   :  { %v415_v54 = vpop.eup %414  ;;  %v328_v55 = vxor.u32 2147483648, %v413_v52 }
 0x138   :  { %v325_v56 = vxor.u32 2147483648, %v415_v54 }
 0x139   :  { %v329_v37 = vsel %vm327_vm4, %v328_v55, %v415_v54 }
 0x13a   :  { %v326_v58 = vsel %vm324_vm5, %v413_v52, %v325_v56 }
 0x13b   :  { %v330_v20 = vsel %vm323_vm6, %v326_v58, %v329_v37 }
 0x13c   :  { %v331_v59 = vsel %vm320_vm8, nan, %v330_v20 }
 0x13d   :  { %334 = vst.msk [vmem:[#allocation2 + $0x8] sm:$0xff] %vm332_vm7, %v331_v59 }
 0x13e   :  { %v417_v61 = vpop.eup %416 }
 0x13f   :  { %v419_v62 = vpop.eup %418  ;;  %v224_v63 = vxor.u32 2147483648, %v417_v61 }
 0x140   :  { %v221_v0 = vxor.u32 2147483648, %v419_v62 }
 0x141   :  { %v225_v1 = vsel %vm223_vm9, %v224_v63, %v419_v62 }
 0x142   :  { %v222_v2 = vsel %vm220_vm10, %v417_v61, %v221_v0 }
 0x143   :  { %v226_v3 = vsel %vm219_vm11, %v222_v2, %v225_v1 }
 0x144   :  { %v227_v13 = vsel %vm216_vm12, nan, %v226_v3 }
 0x145   :  { %333 = vst.msk [vmem:[#allocation2] sm:$0xff] %vm332_vm7, %v227_v13 }
 0x146   :  { %431 = shalt.err (!%p428_p4)
}
 0x147   :  { %s432_s28 = scalar_lea.hbm %s573_s3, 256 }
 0x148   :  { %p433_p5 = scmp.ne.s32.totalorder %s573_s3, %s432_s28  ;;  %p436_p6 = scmp.lt.u32.totalorder %s432_s28, %s573_s3 }
 0x14a   :  { %p438_p7 = pnand %p436_p6, %p433_p5 }
 0x14c   :  { %441 = shalt.err (!%p438_p7)
}
 0x14d   :  { %s451_s6 = smov 128   ;;  %s452_s7 = smov 8  }
 0x14e   :  { %346 = dma.vmem_to_hbm [thread:$0]  %s341_s1, 256, %s573_s3, [#allocation3], %s451_s6, %s451_s6, %s452_s7  }
 0x14f   :  { %442 = dma.done.wait [#allocation3], 256  }
 0x150   :  { %443 = vsyncadd [#allocation3], 4294967040 }
 0x151   :  { %350 = vsyncpa [#allocation3], 1 }

</bundles_post_ra>
